<compile_context>
chip_gen: v5e
topology: v5e:2x2
jax: 0.10.0
libtpu: 0.0.40
codegen_flags: <defaults>
</compile_context>

<pallas_src>
import jax
import jax.numpy as jnp
from jax.experimental import pallas as pl
from jax.experimental.pallas import tpu as pltpu


def _pair(v):
    if isinstance(v, (tuple, list)):
        return int(v[0]), int(v[1])
    return int(v), int(v)


def _patch_gemm_kernel(w_ref, p_ref, b_ref, o_ref):
    """One (OC, K) @ (K, TL) tile on the MXU, f32 accumulation, bias on the VPU.

    w_ref: (OC, K)  compute dtype, VMEM-resident (constant index map)
    p_ref: (K, TL)  compute dtype, streamed patches tile (lane axis = spatial L)
    b_ref: (OC, 1)  f32, VMEM-resident
    o_ref: (OC, TL) output tile -> lands directly in (N, OC, OH*OW) layout
    """
    acc = jnp.dot(w_ref[...], p_ref[...], preferred_element_type=jnp.float32)
    o_ref[...] = (acc + b_ref[...]).astype(o_ref.dtype)


def conv_embedding_forward(x, weight, bias, stride, padding, *,
                           compute_dtype=jnp.bfloat16, out_dtype=None):
    """Conv2d(in_channels, out_channels, kernel_size, stride, padding, bias=True).

    x:      [N, C, H, W]      (NCHW, PyTorch convention)
    weight: [OC, C, KH, KW]   (PyTorch OIHW)
    bias:   [OC]
    returns [N, OC, OH, OW]   (NCHW)
    """
    N, C, H, W = x.shape
    OC, Cw, KH, KW = weight.shape
    assert Cw == C, "weight channel dim must match input channels"
    sh, sw = _pair(stride)
    ph, pw = _pair(padding)
    out_dtype = x.dtype if out_dtype is None else out_dtype

    OH = (H + 2 * ph - KH) // sh + 1
    OW = (W + 2 * pw - KW) // sw + 1
    L = OH * OW            # spatial tokens per image (lane axis of the GEMM)
    K = C * KH * KW        # contraction dim: kept fully resident, never tiled/padded

    # Cast once, early: halves the bytes moved through im2col and the GEMM inputs.
    x_c = x.astype(compute_dtype)

    # ---- im2col -> patches [N, K, L], K flattened in (C, KH, KW) order ----
    # K sits on the sublane axis and L on the lane axis of the kernel block, so
    # neither needs zero-padding (full-dim blocks are legal at any size).
    if ph == 0 and pw == 0 and sh == KH and sw == KW and H == OH * KH and W == OW * KW:
        # Non-overlapping patch fast path: one transpose, no window duplication.
        patches = jnp.transpose(
            x_c.reshape(N, C, OH, KH, OW, KW), (0, 1, 3, 5, 2, 4)
        ).reshape(N, K, L)
    else:
        xp = jnp.pad(x_c, ((0, 0), (0, 0), (ph, ph), (pw, pw)))
        cols = [xp[:, :, kh:kh + sh * (OH - 1) + 1:sh, kw:kw + sw * (OW - 1) + 1:sw]
                for kh in range(KH) for kw in range(KW)]
        patches = jnp.stack(cols, axis=2).reshape(N, K, L)   # (N, C*KH*KW, OH*OW)
    # TODO(synk): the im2col rearrangement still materializes `patches` in HBM once;
    # fusing it into the kernel requires multi-dim transposes of tiny (KH, KW) minor
    # dims that Mosaic does not lower reliably, so it stays in XLA.

    w2 = weight.reshape(OC, K).astype(compute_dtype)   # (OC, K), tiny, VMEM resident
    b2 = bias.astype(jnp.float32).reshape(OC, 1)       # f32 bias, VMEM resident

    # ---- L (lane) tile selection ----
    if L > 512:
        TL = 512                       # big lane-dense tiles, few grid steps
    elif L > 256:
        TL = 256
    elif N == 1 and L > 128:
        TL = 128                       # guarantee >=2 programs for v7x's 2 TCs
    else:
        TL = L                         # tiny problem: single full-dim tile

    in_b = jnp.dtype(compute_dtype).itemsize
    out_b = jnp.dtype(out_dtype).itemsize

    def _block_bytes(tl):              # double-buffered VMEM footprint estimate
        return (2 * K * tl * in_b          # streamed patches tile
                + 2 * OC * tl * out_b      # output tile
                + 2 * OC * K * in_b        # resident weight
                + 2 * OC * 4)              # resident bias (f32)

    while TL >= 256 and _block_bytes(TL) > 16 * 1024 * 1024:
        TL //= 2                        # stays a multiple of 128

    # Leave headroom for compiler scratch: never reserve more than 32 MiB
    # (v7x has only 64 MiB of VMEM per TensorCore).
    vmem_limit = int(min(max(4 * _block_bytes(TL), 8 * 1024 * 1024),
                         32 * 1024 * 1024))

    grid = (N, pl.cdiv(L, TL))          # both axes independent -> megacore-friendly

    out = pl.pallas_call(
        _patch_gemm_kernel,
        out_shape=jax.ShapeDtypeStruct((N, OC, L), out_dtype),
        grid=grid,
        in_specs=[
            # Weight / bias: constant index maps -> fetched once, VMEM-resident.
            pl.BlockSpec((OC, K), lambda n, l: (0, 0)),
            # Patches: one (K, TL) tile per (image, L-tile); K is never re-streamed.
            pl.BlockSpec((None, K, TL), lambda n, l: (n, 0, l)),
            pl.BlockSpec((OC, 1), lambda n, l: (0, 0)),
        ],
        # Output is written directly in (N, OC, L) layout: the NCHW result below is
        # a free reshape, no standalone XLA transpose of the output.
        out_specs=pl.BlockSpec((None, OC, TL), lambda n, l: (n, 0, l)),
        compiler_params=pltpu.CompilerParams(
            dimension_semantics=("parallel", "parallel"),
            vmem_limit_bytes=vmem_limit,
        ),
    )(w2, patches, b2)

    return out.reshape(N, OC, OH, OW)


if __name__ == "__main__":
    # Module config: conv_embedding(in_channels=4, out_channels=32,
    #                               patch_size=4, stride=4, padding=0)
    in_channels, out_channels = 4, 32
    patch_size, stride, padding = 4, 4, 0

    key = jax.random.PRNGKey(0)
    kx, kw, kb = jax.random.split(key, 3)

    x = jax.random.normal(kx, (2, in_channels, 16, 16), dtype=jnp.float32)
    weight = 0.02 * jax.random.normal(
        kw, (out_channels, in_channels, patch_size, patch_size), dtype=jnp.float32)
    bias = 0.01 * jax.random.normal(kb, (out_channels,), dtype=jnp.float32)

    y = conv_embedding_forward(x, weight, bias, stride, padding)
    y = jax.block_until_ready(y)

    # Reference: XLA conv on the same bf16-rounded inputs (the kernel feeds bf16 to
    # the MXU with f32 accumulation), bias added in f32.
    x_q = x.astype(jnp.bfloat16).astype(jnp.float32)
    w_q = weight.astype(jnp.bfloat16).astype(jnp.float32)
    y_ref = jax.lax.conv_general_dilated(
        x_q, w_q, window_strides=(stride, stride),
        padding=[(padding, padding), (padding, padding)],
        dimension_numbers=("NCHW", "OIHW", "NCHW"),
        precision=jax.lax.Precision.HIGHEST,
    ) + bias.reshape(1, -1, 1, 1)
    assert y.shape == y_ref.shape == (2, out_channels, 4, 4)
    assert jnp.allclose(y, y_ref, atol=1e-4, rtol=1e-4)

    print("KERNEL_OK")
</pallas_src>

<mosaic_0001>
module attributes {stable_mosaic.version = 11 : i64} {
  func.func @_patch_gemm_kernel(%arg0: i32, %arg1: i32, %arg2: memref<32x64xbf16, #tpu.memory_space<vmem>>, %arg3: memref<1x64x16xbf16, #tpu.memory_space<vmem>>, %arg4: memref<32x1xf32, #tpu.memory_space<vmem>>, %arg5: memref<1x32x16xf32, #tpu.memory_space<vmem>>) attributes {dimension_semantics = [#tpu.dimension_semantics<parallel>, #tpu.dimension_semantics<parallel>], iteration_bounds = array<i64: 2, 1>, scalar_prefetch = 0 : i64, scratch_operands = 0 : i64, tpu.core_type = #tpu.core_type<tc>, window_params = [{pipeline_mode = #tpu.pipeline_mode<synchronous>, transform_indices = @transform_0, window_bounds = array<i64: 32, 64>}, {transform_indices = @transform_1, window_bounds = array<i64: 1, 64, 16>}, {pipeline_mode = #tpu.pipeline_mode<synchronous>, transform_indices = @transform_2, window_bounds = array<i64: 32, 1>}, {transform_indices = @transform_3, window_bounds = array<i64: 1, 32, 16>}]} {
    %c0 = arith.constant 0 : index
    %c0_0 = arith.constant 0 : index
    %0 = vector.load %arg2[%c0, %c0_0] : memref<32x64xbf16, #tpu.memory_space<vmem>>, vector<32x64xbf16>
    %c0_1 = arith.constant 0 : index
    %c0_2 = arith.constant 0 : index
    %c0_3 = arith.constant 0 : index
    %1 = vector.load %arg3[%c0_1, %c0_2, %c0_3] : memref<1x64x16xbf16, #tpu.memory_space<vmem>>, vector<1x64x16xbf16>
    %2 = vector.shape_cast %1 : vector<1x64x16xbf16> to vector<64x16xbf16>
    %cst = arith.constant dense<0.000000e+00> : vector<32x16xf32>
    %3 = tpu.matmul %0, %2, %cst {dimension_numbers = #tpu.dot_dimension_numbers<[1], [0], [0], [1], [0, 0, 1, 1], [], []>} : vector<32x64xbf16>, vector<64x16xbf16>, vector<32x16xf32> -> vector<32x16xf32>
    %c0_4 = arith.constant 0 : index
    %c0_5 = arith.constant 0 : index
    %4 = vector.load %arg4[%c0_4, %c0_5] : memref<32x1xf32, #tpu.memory_space<vmem>>, vector<32x1xf32>
    %5 = vector.broadcast %4 : vector<32x1xf32> to vector<32x16xf32>
    %6 = arith.addf %3, %5 : vector<32x16xf32>
    %c0_6 = arith.constant 0 : index
    %c0_7 = arith.constant 0 : index
    %c0_8 = arith.constant 0 : index
    %7 = vector.load %arg5[%c0_6, %c0_7, %c0_8] : memref<1x32x16xf32, #tpu.memory_space<vmem>>, vector<1x32x16xf32>
    %8 = vector.shape_cast %7 : vector<1x32x16xf32> to vector<32x16xf32>
    %9 = vector.shape_cast %6 : vector<32x16xf32> to vector<1x32x16xf32>
    tpu.vector_store %arg5[%c0_6, %c0_7, %c0_8], %9 {strides = array<i32>} : memref<1x32x16xf32, #tpu.memory_space<vmem>>, vector<1x32x16xf32>,
    return
  }
  func.func @transform_0(%arg0: i32, %arg1: i32) -> (i32, i32) {
    %c0_i32 = arith.constant 0 : i32
    %c0_i32_0 = arith.constant 0 : i32
    %c0_i32_1 = arith.constant 0 : i32
    return %c0_i32, %c0_i32_0 : i32, i32
  }
  func.func @transform_1(%arg0: i32, %arg1: i32) -> (i32, i32, i32) {
    %c0_i32 = arith.constant 0 : i32
    %c0_i32_0 = arith.constant 0 : i32
    return %arg0, %c0_i32, %arg1 : i32, i32, i32
  }
  func.func @transform_2(%arg0: i32, %arg1: i32) -> (i32, i32) {
    %c0_i32 = arith.constant 0 : i32
    %c0_i32_0 = arith.constant 0 : i32
    %c0_i32_1 = arith.constant 0 : i32
    return %c0_i32, %c0_i32_0 : i32, i32
  }
  func.func @transform_3(%arg0: i32, %arg1: i32) -> (i32, i32, i32) {
    %c0_i32 = arith.constant 0 : i32
    %c0_i32_0 = arith.constant 0 : i32
    return %arg0, %c0_i32, %arg1 : i32, i32, i32
  }
}

</mosaic_0001>

<bundles_post_ra>
// kernel: tpu_custom_call.1
= control target key start
LH: loop header
LB: loop body
LE: loop exit
PB: predicated region body
PF: predicated region fallthrough
CT: control target
= control target key end

     0   :  { %s508_s12 = smov 0   ;;  %s510_s13 = smov 0   ;;  %s562_s0 = inlined_call_operand.vmem [shape: bf16[32,64], index: 0, kind: input, shape index: {}]   ;;  %s563_s1 = inlined_call_operand.vmem [shape: bf16[2,64,16], index: 1, kind: input, shape index: {}]   ;;  %s564_s2 = inlined_call_operand.vmem [shape: f32[32,1], index: 2, kind: input, shape index: {}]   ;;  %s565_s3 = inlined_call_operand.vmem [shape: f32[2,32,16], index: 3, kind: output, shape index: {}]  }
   0x1   :  { %s512_s14 = smov 0  }
   0x2 LB: > { %s25_s15 = sadd.s32 1, %s481_s13  ;;  %p391_p0 = scmp.ge.s32.totalorder %s485_s14, 1  ;;  %s485_s14 = sphi %s512_s14, %s13_s14   ;;  %s481_s13 = sphi %s510_s13, %s567_s13   ;;  %s477_s12 = sphi %s508_s12, %s566_s12  }
   0x3   : > { %p27_p1 = scmp.ge.s32.totalorder %s25_s15, 2  ;;  %p156_p2 = scmp.lt.s32.totalorder %s485_s14, 3 }
   0x5   : > { %s569_s15 = smov (%p27_p1, %s25_s15), 0  ;;  %p157_p3 = pnand %p391_p0, %p156_p2 }
   0x6   : > { %p186_p4 = scmp.lt.s32.totalorder (!%p157_p3), %s477_s12, 1 }
   0x7   : > { %160 = sbr.rel (%p157_p3) target bundleno = 169 (0xa9), region = 32 }
   0xc   : > { %v217_v0 = vld [vmem:[%s564_s2 + $0x10] sm:$0xff]  ;;  %v487_v1 = vmov 0   ;;  %v215_v2 = vld [vmem:[%s564_s2] sm:$0xff]  ;;  %s571_s12 = smov (!%p186_p4, %s477_s12), 1  ;;  %v218_v4 = vld [vmem:[%s564_s2 + $0x18] sm:$0xff]  ;;  %vm273_vm0 = vcmask 523264  }
   0xd   : > { %462 = vset.pattern.permute.xlu1 %v487_v1  ;;  %461 = vset.pattern.permute.xlu0 %v487_v1  ;;  %s424_s20 = sshll.u32 %s571_s12, 5  ;;  %v216_v5 = vld [vmem:[%s564_s2 + $0x8] sm:$0xff]  ;;  %v426_v9 = vld [vmem:[%s562_s0] sm:$0xff]  ;;  %vm299_vm1 = vcmask 130048  }
   0xe   : > { %231 = vperm.xlu1 %462, %v217_v0   ;;  %221 = vperm.xlu0 %461, %v215_v2   ;;  %s193_s23 = scalar_lea.vmem %s563_s1, %s424_s20  ;;  %v427_v10 = vld [vmem:[%s562_s0 + $0x8] sm:$0xff]  ;;  %s201_s7 = scalar_lea.vmem %s565_s3, %s424_s20 }
   0xf   : > { %v431_v3 = vld [vmem:[%s193_s23 + $0x18] sm:$0xff]  ;;  %v430_v6 = vld [vmem:[%s193_s23 + $0x10] sm:$0xff]  ;;  %v429_v7 = vld [vmem:[%s193_s23 + $0x8] sm:$0xff] }
  0x10   : > { %284 = vmatpush.bf16.msra.mxu0 %v431_v3  ;;  %432 = vmatpush.bf16.msra.mxu1 %v431_v3  ;;  %v428_v8 = vld [vmem:[%s193_s23] sm:$0xff] }
  0x14   : > { %285 = vmatpush.bf16.msra.mxu0 %v430_v6  ;;  %433 = vmatpush.bf16.msra.mxu1 %v430_v6 }
  0x16   : > { %236 = vperm.xlu1 %462, %v218_v4   ;;  %226 = vperm.xlu0 %461, %v216_v5  }
  0x18   : > { %286 = vmatpush.bf16.msra.mxu0 %v429_v7  ;;  %434 = vmatpush.bf16.msra.mxu1 %v429_v7 }
  0x1c   : > { %287 = vmatpush.bf16.msra.mxu0 %v428_v8  ;;  %435 = vmatpush.bf16.msra.mxu1 %v428_v8 }
  0x1f   : > { %420 = vmatmul.msk.bf16.vlgmr.msra.gmra.mxu0 %vm273_vm0, %v426_v9  ;;  %421 = vmatmul.msk.bf16.vlgmr.msra.gmra.mxu1 %vm273_vm0, %v427_v10 }
  0x80   : > { %v232_v11 = vpop.permute.xlu1 %231  ;;  %v222_v12 = vpop.permute.xlu0 %221 }
  0x88   : > { %v237_v17 = vpop.permute.xlu1 %236  ;;  %v227_v18 = vpop.permute.xlu0 %226 }
  0x9c   : > { %v289_v13 = vpop.f32.mrf.mxu0  ;;  %v294_v14 = vpop.f32.mrf.mxu1 }
  0x9d   : > { %v290_v15 = vadd.f32 %v289_v13, %v222_v12  ;;  %v295_v16 = vadd.f32 %v294_v14, %v232_v11 }
  0x9f   : > { %300 = vst.msk [vmem:[%s201_s7] sm:$0xff] %vm299_vm1, %v290_v15 }
  0xa0   : > { %302 = vst.msk [vmem:[%s201_s7 + $0x10] sm:$0xff] %vm299_vm1, %v295_v16 }
  0xa4   : > { %v291_v19 = vpop.f32.mrf.mxu0  ;;  %v296_v20 = vpop.f32.mrf.mxu1 }
  0xa5   : > { %v292_v21 = vadd.f32 %v291_v19, %v227_v18  ;;  %v297_v22 = vadd.f32 %v296_v20, %v237_v17 }
  0xa7   : > { %301 = vst.msk [vmem:[%s201_s7 + $0x8] sm:$0xff] %vm299_vm1, %v292_v21 }
  0xa8   : > { %303 = vst.msk [vmem:[%s201_s7 + $0x18] sm:$0xff] %vm299_vm1, %v297_v22 }
  0xa9 PF: > { %s13_s14 = sadd.s32 1, %s485_s14   ;;  %s566_s12 = smov %s481_s13 }
  0xaa   : > { %p10_p5 = scmp.ge.s32.totalorder %s13_s14, 4   ;;  %s567_s13 = smov %s569_s15 }
  0xac   :  { %12 = sbr.rel (!%p10_p5) target bundleno = 2 (0x2), region = 62 }

</bundles_post_ra>
